<compile_context>
chip_gen: v5e
topology: v5e:2x2
jax: 0.10.0
libtpu: 0.0.40
codegen_flags: <defaults>
</compile_context>

<pallas_src>
import functools
import math

import numpy as np
import jax
import jax.numpy as jnp
from jax import lax
from jax.experimental import pallas as pl
from jax.experimental.pallas import tpu as pltpu

LEAKY_SLOPE = 0.01  # nn.LeakyReLU default
BN_EPS = 1e-5       # nn.BatchNorm1d default


def _leaky(z):
    return jnp.where(z > 0, z, LEAKY_SLOPE * z)


def _nearest_exact_indices(l_in, l_out):
    # Static source indices reproducing F.interpolate(mode='nearest-exact').
    j = np.arange(l_out)
    return np.minimum(np.floor((j + 0.5) * l_in / l_out).astype(np.int64),
                      l_in - 1)


def _fold_bn_into_conv(w, b, bn):
    # BN(conv(x, w) + b) == conv(x, s*w) + (s*b + t)   (inference mode)
    gamma, beta, mean, var = bn
    s = gamma / jnp.sqrt(var + BN_EPS)
    t = beta - mean * s
    w_f = (s[:, None, None] * w).astype(jnp.float32)
    shift = (s * b + t).astype(jnp.float32)
    return w_f, shift


@functools.lru_cache(maxsize=None)
def _roll_mode():
    # Tiny probe kernel that pins down pltpu.roll's rotation convention on this
    # JAX/libtpu build; falls back to a concat-based circular shift if needed.
    x = np.arange(8 * 128, dtype=np.float32).reshape(8, 128)

    def k(x_ref, o_ref):
        o_ref[...] = pltpu.roll(x_ref[...], 1, 1)

    try:
        y = np.asarray(pl.pallas_call(
            k, out_shape=jax.ShapeDtypeStruct((8, 128), jnp.float32))(jnp.asarray(x)))
    except Exception:
        return "slice"
    if np.array_equal(y, np.roll(x, 1, axis=1)):
        return "roll_jnp"   # y[i] = x[(i - shift) % n]
    if np.array_equal(y, np.roll(x, -1, axis=1)):
        return "roll_neg"   # y[i] = x[(i + shift) % n]
    return "slice"


def _pack_lanes(a, lseg, bt):
    # (B, C, L) -> (B//bt, C, bt*lseg): each batch element owns a zero-padded
    # lane segment of width lseg; bt elements per grid step packed along lanes.
    B, C, L = a.shape
    a = jnp.pad(a, ((0, 0), (0, 0), (0, lseg - L)))
    return (a.reshape(B // bt, bt, C, lseg)
             .transpose(0, 2, 1, 3)
             .reshape(B // bt, C, bt * lseg))


def decoder_block_forward(x, res, params, *, scale):
    B, Cin, Lx = x.shape
    _, F, Lres = res.shape
    Kup = scale
    Kc = params["w_contract"].shape[-1]
    KCup = Kup * Cin

    L_interp = scale * (Lx + 1) - 1      # interpolate target size
    L_up = L_interp - Kup + 1            # after up-conv (valid, k=scale)

    # centre_crop -> static offsets folded into the roll shifts
    if L_up == Lres:
        up_lo, res_lo, L_cat = 0, 0, L_up
    else:
        d = abs(L_up - Lres)
        lcrop = d // 2
        if L_up < Lres:
            up_lo, res_lo, L_cat = 0, lcrop, L_up
        else:
            up_lo, res_lo, L_cat = lcrop, 0, Lres

    L1 = L_cat - Kc + 1   # after contract conv
    L2 = L1 - Kc + 1      # after block.conv1
    L3 = L2 - Kc + 1      # after block.conv2 -> final length

    # ---- upsample (nearest-exact) + up-conv im2col, hoisted into XLA ----
    # TODO(synk): lane-axis gather has no reliable in-kernel Mosaic lowering;
    # done as a cheap XLA take on the (small) input instead of a dense matmul.
    src = _nearest_exact_indices(Lx, L_interp)
    xi = jnp.take(x.astype(jnp.float32), jnp.asarray(src), axis=2)  # (B,Cin,L_interp)
    xi_col = jnp.concatenate([xi[:, :, j:j + L_up] for j in range(Kup)],
                             axis=1)                                # (B,Kup*Cin,L_up)

    # ---- fold BN into conv weights / shifts (inference / running stats) ----
    # TODO(synk): training-mode BatchNorm (batch statistics) not implemented.
    w_up, t_up = _fold_bn_into_conv(params["w_up"], params["b_up"], params["bn_up"])
    w_c, t_c = _fold_bn_into_conv(params["w_contract"], params["b_contract"],
                                  params["bn_contract"])
    w_1, t_1 = _fold_bn_into_conv(params["w1"], params["b1"], params["bn1"])
    w_2, t_2 = _fold_bn_into_conv(params["w2"], params["b2"], params["bn2"])

    # up-conv weight as one (F, Kup*Cin) im2col matrix (tap-major columns)
    w_up2d = jnp.transpose(w_up, (0, 2, 1)).reshape(F, KCup).astype(jnp.bfloat16)

    def taps(w):  # (F, Cin, K) -> (K, F, Cin) : one (F, Cin) matrix per tap
        return jnp.moveaxis(w, -1, 0)

    # [0]=contract/up-half, [1]=contract/res-half, [2]=conv1, [3]=conv2
    w_taps = jnp.stack([taps(w_c[:, :F, :]), taps(w_c[:, F:, :]),
                        taps(w_1), taps(w_2)], axis=0).astype(jnp.bfloat16)  # (4,Kc,F,F)
    # [0]=up, [1]=contract, [2]=conv1, [3]=conv2
    shift_stack = jnp.stack([t_up, t_c, t_1, t_2], axis=0)[:, :, None]       # (4,F,1) f32

    # ---- batch tiling: pack bt elements into lanes, keep >=2 grid steps ----
    divisors = [d for d in range(1, B + 1) if B % d == 0]
    cands = [d for d in divisors if d <= 8 and B // d >= 2]
    bt = max(cands) if cands else 1               # v7x: both TCs get work

    lseg_min = max(L_up, Lres)
    q = 128 // math.gcd(bt, 128)
    Lseg = ((lseg_min + q - 1) // q) * q          # bt*Lseg is a multiple of 128
    nlanes = bt * Lseg

    xcol_p = _pack_lanes(xi_col, Lseg, bt).astype(jnp.bfloat16)   # (B//bt, KCup, nlanes)
    res_p = _pack_lanes(res.astype(jnp.float32), Lseg, bt)        # (B//bt, F, nlanes) f32

    roll_mode = _roll_mode()

    def shift_left(v, s):
        # y[:, c] = v[:, c + s] (circular); wrapped lanes only ever land in
        # invalid (garbage) columns because valid lengths shrink layer-to-layer
        # while the segment stride Lseg stays fixed.
        if s == 0:
            return v
        if roll_mode == "roll_jnp":
            return pltpu.roll(v, (nlanes - s) % nlanes, 1)
        if roll_mode == "roll_neg":
            return pltpu.roll(v, s, 1)
        return jnp.concatenate([v[:, s:], v[:, :s]], axis=1)   # safe fallback

    def kernel(xcol_ref, res_ref, wup_ref, wtap_ref, shift_ref, o_ref):
        s_up, s_c = shift_ref[0], shift_ref[1]      # (F, 1) f32
        s_1, s_2 = shift_ref[2], shift_ref[3]

        # UpConvBlock: upsample + im2col already applied -> one MXU dot,
        # folded-BN shift + LeakyReLU epilogue in f32.
        up = _leaky(jnp.dot(wup_ref[...], xcol_ref[...],
                            preferred_element_type=jnp.float32) + s_up)

        def conv_taps(widx, v_f32, off, acc=None):
            # Valid conv as Kc roll-accumulated tap matmuls (bf16 operands,
            # f32 accumulation); centre-crop offset folded into the shift.
            for j in range(Kc):
                vs = shift_left(v_f32, off + j).astype(jnp.bfloat16)
                d = jnp.dot(wtap_ref[widx, j], vs,
                            preferred_element_type=jnp.float32)
                acc = d if acc is None else acc + d
            return acc

        # contract conv: split weights over the up / res halves -> no concat
        h = conv_taps(0, up, up_lo)
        h = conv_taps(1, res_ref[...], res_lo, h) + s_c      # valid [0, L1)

        # BasicBlock: conv->bn->act->conv->bn, centre-narrowed residual, act
        o1 = _leaky(conv_taps(2, h, 0) + s_1)                # valid [0, L2)
        o2 = conv_taps(3, o1, 0) + s_2                       # valid [0, L3)
        skip = shift_left(h, Kc - 1)                         # valid [0, L3)
        o_ref[...] = _leaky(o2 + skip).astype(o_ref.dtype)   # lane-dense store

    in_specs = [
        pl.BlockSpec((None, KCup, nlanes), lambda i: (i, 0, 0)),
        pl.BlockSpec((None, F, nlanes), lambda i: (i, 0, 0)),
        pl.BlockSpec((F, KCup), lambda i: (0, 0)),
        pl.BlockSpec((4, Kc, F, F), lambda i: (0, 0, 0, 0)),
        pl.BlockSpec((4, F, 1), lambda i: (0, 0, 0)),
    ]
    out_spec = pl.BlockSpec((None, F, nlanes), lambda i: (i, 0, 0))

    # explicit VMEM budget (double-buffered IO blocks + weights, generous margin)
    blk_bytes = 2 * (KCup * nlanes * 2 + F * nlanes * 4 + F * nlanes * 4)
    wt_bytes = 2 * (F * KCup * 2 + 4 * Kc * F * F * 2 + 4 * F * 4)
    vmem_limit = int(min(32 * 1024 * 1024, max(8 << 20, 4 * (blk_bytes + wt_bytes))))

    out_full = pl.pallas_call(
        kernel,
        out_shape=jax.ShapeDtypeStruct((B // bt, F, nlanes), x.dtype),
        grid=(B // bt,),
        in_specs=in_specs,
        out_specs=out_spec,
        compiler_params=pltpu.CompilerParams(
            dimension_semantics=("parallel",),
            vmem_limit_bytes=vmem_limit),
    )(xcol_p, res_p, w_up2d, w_taps, shift_stack)

    # un-pack lanes -> (B, F, L3) in XLA (layout plumbing, not compute)
    out = (out_full.reshape(B // bt, F, bt, Lseg)
                   .transpose(0, 2, 1, 3)
                   .reshape(B, F, Lseg))
    return out[:, :, :L3]


# ---------------- pure-JAX reference (for cross-check) ----------------
def ref_forward(x, res, params, *, scale):
    def conv1d(z, w, b):
        out = lax.conv_general_dilated(z, w, (1,), "VALID",
                                       dimension_numbers=("NCH", "OIH", "NCH"))
        return out + b[None, :, None]

    def bn(z, stats):
        g, bta, m, v = stats
        return (g[None, :, None] * (z - m[None, :, None])
                / jnp.sqrt(v[None, :, None] + BN_EPS) + bta[None, :, None])

    def leaky(z):
        return jnp.where(z > 0, z, LEAKY_SLOPE * z)

    B, Cin, Lx = x.shape
    L_interp = scale * (Lx + 1) - 1
    src = _nearest_exact_indices(Lx, L_interp)
    xi = x[:, :, src]
    up = leaky(bn(conv1d(xi, params["w_up"], params["b_up"]), params["bn_up"]))

    L_up, Lres = up.shape[-1], res.shape[-1]
    if L_up != Lres:
        d = abs(L_up - Lres)
        l, r = d // 2, d - d // 2
        if L_up < Lres:
            res = res[..., l:Lres - r]
        else:
            up = up[..., l:L_up - r]
    cat = jnp.concatenate([up, res], axis=1)
    h = bn(conv1d(cat, params["w_contract"], params["b_contract"]),
           params["bn_contract"])
    out = leaky(bn(conv1d(h, params["w1"], params["b1"]), params["bn1"]))
    out = bn(conv1d(out, params["w2"], params["b2"]), params["bn2"])
    L3 = out.shape[-1]
    start = (h.shape[-1] - L3) // 2
    skip = h[..., start:start + L3]
    return leaky(out + skip)


if __name__ == "__main__":
    B, Cin, F, scale, ksize = 2, 4, 8, 2, 3
    Lx, Lres = 8, 20

    ks = jax.random.split(jax.random.PRNGKey(0), 32)

    def wgen(k, shape, fan_in):
        bound = 1.0 / math.sqrt(fan_in)
        return jax.random.uniform(k, shape, jnp.float32, -bound, bound)

    def bn_params(kg, kb, km, kv, c):
        gamma = 1.0 + 0.1 * jax.random.normal(kg, (c,), jnp.float32)
        beta = 0.1 * jax.random.normal(kb, (c,), jnp.float32)
        mean = 0.1 * jax.random.normal(km, (c,), jnp.float32)
        var = 0.5 + jax.random.uniform(kv, (c,), jnp.float32)
        return (gamma, beta, mean, var)

    params = {
        "w_up": wgen(ks[0], (F, Cin, scale), Cin * scale),
        "b_up": wgen(ks[1], (F,), Cin * scale),
        "bn_up": bn_params(ks[2], ks[3], ks[4], ks[5], F),
        "w_contract": wgen(ks[6], (F, 2 * F, ksize), 2 * F * ksize),
        "b_contract": wgen(ks[7], (F,), 2 * F * ksize),
        "bn_contract": bn_params(ks[8], ks[9], ks[10], ks[11], F),
        "w1": wgen(ks[12], (F, F, ksize), F * ksize),
        "b1": wgen(ks[13], (F,), F * ksize),
        "bn1": bn_params(ks[14], ks[15], ks[16], ks[17], F),
        "w2": wgen(ks[18], (F, F, ksize), F * ksize),
        "b2": wgen(ks[19], (F,), F * ksize),
        "bn2": bn_params(ks[20], ks[21], ks[22], ks[23], F),
    }

    x = jax.random.normal(ks[24], (B, Cin, Lx), jnp.float32)
    res = jax.random.normal(ks[25], (B, F, Lres), jnp.float32)

    out = decoder_block_forward(x, res, params, scale=scale)
    out = jax.block_until_ready(out)

    ref = ref_forward(x, res, params, scale=scale)
    assert out.shape == ref.shape
    # bf16 MXU operands (f32 accumulation) -> looser tolerance than pure f32.
    np.testing.assert_allclose(np.asarray(out), np.asarray(ref),
                               rtol=5e-2, atol=5e-2)
    print("KERNEL_OK")
</pallas_src>

<mosaic_0001>
module attributes {stable_mosaic.version = 11 : i64} {
  func.func @k(%arg0: memref<8x128xf32, #tpu.memory_space<vmem>>, %arg1: memref<8x128xf32, #tpu.memory_space<vmem>>) attributes {dimension_semantics = [], scalar_prefetch = 0 : i64, scratch_operands = 0 : i64, tpu.core_type = #tpu.core_type<tc>} {
    %c0 = arith.constant 0 : index
    %c0_0 = arith.constant 0 : index
    %0 = vector.load %arg0[%c0, %c0_0] : memref<8x128xf32, #tpu.memory_space<vmem>>, vector<8x128xf32>
    %c1_i32 = arith.constant 1 : i32
    %1 = tpu.dynamic_rotate %0 by %c1_i32 dim 1 : vector<8x128xf32>, i32 -> vector<8x128xf32>
    %c0_1 = arith.constant 0 : index
    %c0_2 = arith.constant 0 : index
    %2 = vector.load %arg1[%c0_1, %c0_2] : memref<8x128xf32, #tpu.memory_space<vmem>>, vector<8x128xf32>
    tpu.vector_store %arg1[%c0_1, %c0_2], %1 {strides = array<i32>} : memref<8x128xf32, #tpu.memory_space<vmem>>, vector<8x128xf32>,
    return
  }
}

module attributes {stable_mosaic.version = 11 : i64} {
  func.func @kernel(%arg0: i32, %arg1: memref<1x8x128xbf16, #tpu.memory_space<vmem>>, %arg2: memref<1x8x128xf32, #tpu.memory_space<vmem>>, %arg3: memref<8x8xbf16, #tpu.memory_space<vmem>>, %arg4: memref<4x3x8x8xbf16, #tpu.memory_space<vmem>>, %arg5: memref<4x8x1xf32, #tpu.memory_space<vmem>>, %arg6: memref<1x8x128xf32, #tpu.memory_space<vmem>>) attributes {dimension_semantics = [#tpu.dimension_semantics<parallel>], iteration_bounds = array<i64: 2>, scalar_prefetch = 0 : i64, scratch_operands = 0 : i64, tpu.core_type = #tpu.core_type<tc>, window_params = [{transform_indices = @transform_0, window_bounds = array<i64: 1, 8, 128>}, {transform_indices = @transform_1, window_bounds = array<i64: 1, 8, 128>}, {pipeline_mode = #tpu.pipeline_mode<synchronous>, transform_indices = @transform_2, window_bounds = array<i64: 8, 8>}, {pipeline_mode = #tpu.pipeline_mode<synchronous>, transform_indices = @transform_3, window_bounds = array<i64: 4, 3, 8, 8>}, {pipeline_mode = #tpu.pipeline_mode<synchronous>, transform_indices = @transform_4, window_bounds = array<i64: 4, 8, 1>}, {transform_indices = @transform_5, window_bounds = array<i64: 1, 8, 128>}]} {
    %c0 = arith.constant 0 : index
    %c0_0 = arith.constant 0 : index
    %c0_1 = arith.constant 0 : index
    %0 = vector.load %arg5[%c0, %c0_0, %c0_1] : memref<4x8x1xf32, #tpu.memory_space<vmem>>, vector<1x8x1xf32>
    %1 = vector.shape_cast %0 : vector<1x8x1xf32> to vector<8x1xf32>
    %c1 = arith.constant 1 : index
    %c0_2 = arith.constant 0 : index
    %c0_3 = arith.constant 0 : index
    %2 = vector.load %arg5[%c1, %c0_2, %c0_3] : memref<4x8x1xf32, #tpu.memory_space<vmem>>, vector<1x8x1xf32>
    %3 = vector.shape_cast %2 : vector<1x8x1xf32> to vector<8x1xf32>
    %c2 = arith.constant 2 : index
    %c0_4 = arith.constant 0 : index
    %c0_5 = arith.constant 0 : index
    %4 = vector.load %arg5[%c2, %c0_4, %c0_5] : memref<4x8x1xf32, #tpu.memory_space<vmem>>, vector<1x8x1xf32>
    %5 = vector.shape_cast %4 : vector<1x8x1xf32> to vector<8x1xf32>
    %c3 = arith.constant 3 : index
    %c0_6 = arith.constant 0 : index
    %c0_7 = arith.constant 0 : index
    %6 = vector.load %arg5[%c3, %c0_6, %c0_7] : memref<4x8x1xf32, #tpu.memory_space<vmem>>, vector<1x8x1xf32>
    %7 = vector.shape_cast %6 : vector<1x8x1xf32> to vector<8x1xf32>
    %c0_8 = arith.constant 0 : index
    %c0_9 = arith.constant 0 : index
    %8 = vector.load %arg3[%c0_8, %c0_9] : memref<8x8xbf16, #tpu.memory_space<vmem>>, vector<8x8xbf16>
    %c0_10 = arith.constant 0 : index
    %c0_11 = arith.constant 0 : index
    %c0_12 = arith.constant 0 : index
    %9 = vector.load %arg1[%c0_10, %c0_11, %c0_12] : memref<1x8x128xbf16, #tpu.memory_space<vmem>>, vector<1x8x128xbf16>
    %10 = vector.shape_cast %9 : vector<1x8x128xbf16> to vector<8x128xbf16>
    %cst = arith.constant dense<0.000000e+00> : vector<8x128xf32>
    %11 = tpu.matmul %8, %10, %cst {dimension_numbers = #tpu.dot_dimension_numbers<[1], [0], [0], [1], [0, 0, 1, 1], [], []>} : vector<8x8xbf16>, vector<8x128xbf16>, vector<8x128xf32> -> vector<8x128xf32>
    %12 = vector.broadcast %1 : vector<8x1xf32> to vector<8x128xf32>
    %13 = arith.addf %11, %12 : vector<8x128xf32>
    %cst_13 = arith.constant 0.000000e+00 : f32
    %14 = vector.broadcast %cst_13 : f32 to vector<8x128xf32>
    %15 = arith.cmpf ogt, %13, %14 : vector<8x128xf32>
    %cst_14 = arith.constant 0.00999999977 : f32
    %16 = vector.broadcast %cst_14 : f32 to vector<8x128xf32>
    %17 = arith.mulf %16, %13 : vector<8x128xf32>
    %18 = arith.select %15, %13, %17 : vector<8x128xi1>, vector<8x128xf32>
    %19 = arith.truncf %18 : vector<8x128xf32> to vector<8x128xbf16>
    %c0_15 = arith.constant 0 : index
    %c0_16 = arith.constant 0 : index
    %c0_17 = arith.constant 0 : index
    %c0_18 = arith.constant 0 : index
    %20 = vector.load %arg4[%c0_15, %c0_16, %c0_17, %c0_18] : memref<4x3x8x8xbf16, #tpu.memory_space<vmem>>, vector<1x1x8x8xbf16>
    %21 = vector.shape_cast %20 : vector<1x1x8x8xbf16> to vector<8x8xbf16>
    %cst_19 = arith.constant dense<0.000000e+00> : vector<8x128xf32>
    %22 = tpu.matmul %21, %19, %cst_19 {dimension_numbers = #tpu.dot_dimension_numbers<[1], [0], [0], [1], [0, 0, 1, 1], [], []>} : vector<8x8xbf16>, vector<8x128xbf16>, vector<8x128xf32> -> vector<8x128xf32>
    %23 = vector.extract_strided_slice %18 {offsets = [0, 1], sizes = [8, 127], strides = [1, 1]} : vector<8x128xf32> to vector<8x127xf32>
    %24 = vector.extract_strided_slice %18 {offsets = [0, 0], sizes = [8, 1], strides = [1, 1]} : vector<8x128xf32> to vector<8x1xf32>
    %25 = tpu.concatenate %23, %24 in 1 : vector<8x127xf32>, vector<8x1xf32> -> vector<8x128xf32>
    %26 = arith.truncf %25 : vector<8x128xf32> to vector<8x128xbf16>
    %c0_20 = arith.constant 0 : index
    %c1_21 = arith.constant 1 : index
    %c0_22 = arith.constant 0 : index
    %c0_23 = arith.constant 0 : index
    %27 = vector.load %arg4[%c0_20, %c1_21, %c0_22, %c0_23] : memref<4x3x8x8xbf16, #tpu.memory_space<vmem>>, vector<1x1x8x8xbf16>
    %28 = vector.shape_cast %27 : vector<1x1x8x8xbf16> to vector<8x8xbf16>
    %cst_24 = arith.constant dense<0.000000e+00> : vector<8x128xf32>
    %29 = tpu.matmul %28, %26, %cst_24 {dimension_numbers = #tpu.dot_dimension_numbers<[1], [0], [0], [1], [0, 0, 1, 1], [], []>} : vector<8x8xbf16>, vector<8x128xbf16>, vector<8x128xf32> -> vector<8x128xf32>
    %30 = arith.addf %22, %29 : vector<8x128xf32>
    %31 = vector.extract_strided_slice %18 {offsets = [0, 2], sizes = [8, 126], strides = [1, 1]} : vector<8x128xf32> to vector<8x126xf32>
    %32 = vector.extract_strided_slice %18 {offsets = [0, 0], sizes = [8, 2], strides = [1, 1]} : vector<8x128xf32> to vector<8x2xf32>
    %33 = tpu.concatenate %31, %32 in 1 : vector<8x126xf32>, vector<8x2xf32> -> vector<8x128xf32>
    %34 = arith.truncf %33 : vector<8x128xf32> to vector<8x128xbf16>
    %c0_25 = arith.constant 0 : index
    %c2_26 = arith.constant 2 : index
    %c0_27 = arith.constant 0 : index
    %c0_28 = arith.constant 0 : index
    %35 = vector.load %arg4[%c0_25, %c2_26, %c0_27, %c0_28] : memref<4x3x8x8xbf16, #tpu.memory_space<vmem>>, vector<1x1x8x8xbf16>
    %36 = vector.shape_cast %35 : vector<1x1x8x8xbf16> to vector<8x8xbf16>
    %cst_29 = arith.constant dense<0.000000e+00> : vector<8x128xf32>
    %37 = tpu.matmul %36, %34, %cst_29 {dimension_numbers = #tpu.dot_dimension_numbers<[1], [0], [0], [1], [0, 0, 1, 1], [], []>} : vector<8x8xbf16>, vector<8x128xbf16>, vector<8x128xf32> -> vector<8x128xf32>
    %38 = arith.addf %30, %37 : vector<8x128xf32>
    %c0_30 = arith.constant 0 : index
    %c0_31 = arith.constant 0 : index
    %c0_32 = arith.constant 0 : index
    %39 = vector.load %arg2[%c0_30, %c0_31, %c0_32] : memref<1x8x128xf32, #tpu.memory_space<vmem>>, vector<1x8x128xf32>
    %40 = vector.shape_cast %39 : vector<1x8x128xf32> to vector<8x128xf32>
    %41 = vector.extract_strided_slice %40 {offsets = [0, 2], sizes = [8, 126], strides = [1, 1]} : vector<8x128xf32> to vector<8x126xf32>
    %42 = vector.extract_strided_slice %40 {offsets = [0, 0], sizes = [8, 2], strides = [1, 1]} : vector<8x128xf32> to vector<8x2xf32>
    %43 = tpu.concatenate %41, %42 in 1 : vector<8x126xf32>, vector<8x2xf32> -> vector<8x128xf32>
    %44 = arith.truncf %43 : vector<8x128xf32> to vector<8x128xbf16>
    %c1_33 = arith.constant 1 : index
    %c0_34 = arith.constant 0 : index
    %c0_35 = arith.constant 0 : index
    %c0_36 = arith.constant 0 : index
    %45 = vector.load %arg4[%c1_33, %c0_34, %c0_35, %c0_36] : memref<4x3x8x8xbf16, #tpu.memory_space<vmem>>, vector<1x1x8x8xbf16>
    %46 = vector.shape_cast %45 : vector<1x1x8x8xbf16> to vector<8x8xbf16>
    %cst_37 = arith.constant dense<0.000000e+00> : vector<8x128xf32>
    %47 = tpu.matmul %46, %44, %cst_37 {dimension_numbers = #tpu.dot_dimension_numbers<[1], [0], [0], [1], [0, 0, 1, 1], [], []>} : vector<8x8xbf16>, vector<8x128xbf16>, vector<8x128xf32> -> vector<8x128xf32>
    %48 = arith.addf %38, %47 : vector<8x128xf32>
    %49 = vector.extract_strided_slice %40 {offsets = [0, 3], sizes = [8, 125], strides = [1, 1]} : vector<8x128xf32> to vector<8x125xf32>
    %50 = vector.extract_strided_slice %40 {offsets = [0, 0], sizes = [8, 3], strides = [1, 1]} : vector<8x128xf32> to vector<8x3xf32>
    %51 = tpu.concatenate %49, %50 in 1 : vector<8x125xf32>, vector<8x3xf32> -> vector<8x128xf32>
    %52 = arith.truncf %51 : vector<8x128xf32> to vector<8x128xbf16>
    %c1_38 = arith.constant 1 : index
    %c1_39 = arith.constant 1 : index
    %c0_40 = arith.constant 0 : index
    %c0_41 = arith.constant 0 : index
    %53 = vector.load %arg4[%c1_38, %c1_39, %c0_40, %c0_41] : memref<4x3x8x8xbf16, #tpu.memory_space<vmem>>, vector<1x1x8x8xbf16>
    %54 = vector.shape_cast %53 : vector<1x1x8x8xbf16> to vector<8x8xbf16>
    %cst_42 = arith.constant dense<0.000000e+00> : vector<8x128xf32>
    %55 = tpu.matmul %54, %52, %cst_42 {dimension_numbers = #tpu.dot_dimension_numbers<[1], [0], [0], [1], [0, 0, 1, 1], [], []>} : vector<8x8xbf16>, vector<8x128xbf16>, vector<8x128xf32> -> vector<8x128xf32>
    %56 = arith.addf %48, %55 : vector<8x128xf32>
    %57 = vector.extract_strided_slice %40 {offsets = [0, 4], sizes = [8, 124], strides = [1, 1]} : vector<8x128xf32> to vector<8x124xf32>
    %58 = vector.extract_strided_slice %40 {offsets = [0, 0], sizes = [8, 4], strides = [1, 1]} : vector<8x128xf32> to vector<8x4xf32>
    %59 = tpu.concatenate %57, %58 in 1 : vector<8x124xf32>, vector<8x4xf32> -> vector<8x128xf32>
    %60 = arith.truncf %59 : vector<8x128xf32> to vector<8x128xbf16>
    %c1_43 = arith.constant 1 : index
    %c2_44 = arith.constant 2 : index
    %c0_45 = arith.constant 0 : index
    %c0_46 = arith.constant 0 : index
    %61 = vector.load %arg4[%c1_43, %c2_44, %c0_45, %c0_46] : memref<4x3x8x8xbf16, #tpu.memory_space<vmem>>, vector<1x1x8x8xbf16>
    %62 = vector.shape_cast %61 : vector<1x1x8x8xbf16> to vector<8x8xbf16>
    %cst_47 = arith.constant dense<0.000000e+00> : vector<8x128xf32>
    %63 = tpu.matmul %62, %60, %cst_47 {dimension_numbers = #tpu.dot_dimension_numbers<[1], [0], [0], [1], [0, 0, 1, 1], [], []>} : vector<8x8xbf16>, vector<8x128xbf16>, vector<8x128xf32> -> vector<8x128xf32>
    %64 = arith.addf %56, %63 : vector<8x128xf32>
    %65 = vector.broadcast %3 : vector<8x1xf32> to vector<8x128xf32>
    %66 = arith.addf %64, %65 : vector<8x128xf32>
    %67 = arith.truncf %66 : vector<8x128xf32> to vector<8x128xbf16>
    %c2_48 = arith.constant 2 : index
    %c0_49 = arith.constant 0 : index
    %c0_50 = arith.constant 0 : index
    %c0_51 = arith.constant 0 : index
    %68 = vector.load %arg4[%c2_48, %c0_49, %c0_50, %c0_51] : memref<4x3x8x8xbf16, #tpu.memory_space<vmem>>, vector<1x1x8x8xbf16>
    %69 = vector.shape_cast %68 : vector<1x1x8x8xbf16> to vector<8x8xbf16>
    %cst_52 = arith.constant dense<0.000000e+00> : vector<8x128xf32>
    %70 = tpu.matmul %69, %67, %cst_52 {dimension_numbers = #tpu.dot_dimension_numbers<[1], [0], [0], [1], [0, 0, 1, 1], [], []>} : vector<8x8xbf16>, vector<8x128xbf16>, vector<8x128xf32> -> vector<8x128xf32>
    %71 = vector.extract_strided_slice %66 {offsets = [0, 1], sizes = [8, 127], strides = [1, 1]} : vector<8x128xf32> to vector<8x127xf32>
    %72 = vector.extract_strided_slice %66 {offsets = [0, 0], sizes = [8, 1], strides = [1, 1]} : vector<8x128xf32> to vector<8x1xf32>
    %73 = tpu.concatenate %71, %72 in 1 : vector<8x127xf32>, vector<8x1xf32> -> vector<8x128xf32>
    %74 = arith.truncf %73 : vector<8x128xf32> to vector<8x128xbf16>
    %c2_53 = arith.constant 2 : index
    %c1_54 = arith.constant 1 : index
    %c0_55 = arith.constant 0 : index
    %c0_56 = arith.constant 0 : index
    %75 = vector.load %arg4[%c2_53, %c1_54, %c0_55, %c0_56] : memref<4x3x8x8xbf16, #tpu.memory_space<vmem>>, vector<1x1x8x8xbf16>
    %76 = vector.shape_cast %75 : vector<1x1x8x8xbf16> to vector<8x8xbf16>
    %cst_57 = arith.constant dense<0.000000e+00> : vector<8x128xf32>
    %77 = tpu.matmul %76, %74, %cst_57 {dimension_numbers = #tpu.dot_dimension_numbers<[1], [0], [0], [1], [0, 0, 1, 1], [], []>} : vector<8x8xbf16>, vector<8x128xbf16>, vector<8x128xf32> -> vector<8x128xf32>
    %78 = arith.addf %70, %77 : vector<8x128xf32>
    %79 = vector.extract_strided_slice %66 {offsets = [0, 2], sizes = [8, 126], strides = [1, 1]} : vector<8x128xf32> to vector<8x126xf32>
    %80 = vector.extract_strided_slice %66 {offsets = [0, 0], sizes = [8, 2], strides = [1, 1]} : vector<8x128xf32> to vector<8x2xf32>
    %81 = tpu.concatenate %79, %80 in 1 : vector<8x126xf32>, vector<8x2xf32> -> vector<8x128xf32>
    %82 = arith.truncf %81 : vector<8x128xf32> to vector<8x128xbf16>
    %c2_58 = arith.constant 2 : index
    %c2_59 = arith.constant 2 : index
    %c0_60 = arith.constant 0 : index
    %c0_61 = arith.constant 0 : index
    %83 = vector.load %arg4[%c2_58, %c2_59, %c0_60, %c0_61] : memref<4x3x8x8xbf16, #tpu.memory_space<vmem>>, vector<1x1x8x8xbf16>
    %84 = vector.shape_cast %83 : vector<1x1x8x8xbf16> to vector<8x8xbf16>
    %cst_62 = arith.constant dense<0.000000e+00> : vector<8x128xf32>
    %85 = tpu.matmul %84, %82, %cst_62 {dimension_numbers = #tpu.dot_dimension_numbers<[1], [0], [0], [1], [0, 0, 1, 1], [], []>} : vector<8x8xbf16>, vector<8x128xbf16>, vector<8x128xf32> -> vector<8x128xf32>
    %86 = arith.addf %78, %85 : vector<8x128xf32>
    %87 = vector.broadcast %5 : vector<8x1xf32> to vector<8x128xf32>
    %88 = arith.addf %86, %87 : vector<8x128xf32>
    %cst_63 = arith.constant 0.000000e+00 : f32
    %89 = vector.broadcast %cst_63 : f32 to vector<8x128xf32>
    %90 = arith.cmpf ogt, %88, %89 : vector<8x128xf32>
    %cst_64 = arith.constant 0.00999999977 : f32
    %91 = vector.broadcast %cst_64 : f32 to vector<8x128xf32>
    %92 = arith.mulf %91, %88 : vector<8x128xf32>
    %93 = arith.select %90, %88, %92 : vector<8x128xi1>, vector<8x128xf32>
    %94 = arith.truncf %93 : vector<8x128xf32> to vector<8x128xbf16>
    %c3_65 = arith.constant 3 : index
    %c0_66 = arith.constant 0 : index
    %c0_67 = arith.constant 0 : index
    %c0_68 = arith.constant 0 : index
    %95 = vector.load %arg4[%c3_65, %c0_66, %c0_67, %c0_68] : memref<4x3x8x8xbf16, #tpu.memory_space<vmem>>, vector<1x1x8x8xbf16>
    %96 = vector.shape_cast %95 : vector<1x1x8x8xbf16> to vector<8x8xbf16>
    %cst_69 = arith.constant dense<0.000000e+00> : vector<8x128xf32>
    %97 = tpu.matmul %96, %94, %cst_69 {dimension_numbers = #tpu.dot_dimension_numbers<[1], [0], [0], [1], [0, 0, 1, 1], [], []>} : vector<8x8xbf16>, vector<8x128xbf16>, vector<8x128xf32> -> vector<8x128xf32>
    %98 = vector.extract_strided_slice %93 {offsets = [0, 1], sizes = [8, 127], strides = [1, 1]} : vector<8x128xf32> to vector<8x127xf32>
    %99 = vector.extract_strided_slice %93 {offsets = [0, 0], sizes = [8, 1], strides = [1, 1]} : vector<8x128xf32> to vector<8x1xf32>
    %100 = tpu.concatenate %98, %99 in 1 : vector<8x127xf32>, vector<8x1xf32> -> vector<8x128xf32>
    %101 = arith.truncf %100 : vector<8x128xf32> to vector<8x128xbf16>
    %c3_70 = arith.constant 3 : index
    %c1_71 = arith.constant 1 : index
    %c0_72 = arith.constant 0 : index
    %c0_73 = arith.constant 0 : index
    %102 = vector.load %arg4[%c3_70, %c1_71, %c0_72, %c0_73] : memref<4x3x8x8xbf16, #tpu.memory_space<vmem>>, vector<1x1x8x8xbf16>
    %103 = vector.shape_cast %102 : vector<1x1x8x8xbf16> to vector<8x8xbf16>
    %cst_74 = arith.constant dense<0.000000e+00> : vector<8x128xf32>
    %104 = tpu.matmul %103, %101, %cst_74 {dimension_numbers = #tpu.dot_dimension_numbers<[1], [0], [0], [1], [0, 0, 1, 1], [], []>} : vector<8x8xbf16>, vector<8x128xbf16>, vector<8x128xf32> -> vector<8x128xf32>
    %105 = arith.addf %97, %104 : vector<8x128xf32>
    %106 = vector.extract_strided_slice %93 {offsets = [0, 2], sizes = [8, 126], strides = [1, 1]} : vector<8x128xf32> to vector<8x126xf32>
    %107 = vector.extract_strided_slice %93 {offsets = [0, 0], sizes = [8, 2], strides = [1, 1]} : vector<8x128xf32> to vector<8x2xf32>
    %108 = tpu.concatenate %106, %107 in 1 : vector<8x126xf32>, vector<8x2xf32> -> vector<8x128xf32>
    %109 = arith.truncf %108 : vector<8x128xf32> to vector<8x128xbf16>
    %c3_75 = arith.constant 3 : index
    %c2_76 = arith.constant 2 : index
    %c0_77 = arith.constant 0 : index
    %c0_78 = arith.constant 0 : index
    %110 = vector.load %arg4[%c3_75, %c2_76, %c0_77, %c0_78] : memref<4x3x8x8xbf16, #tpu.memory_space<vmem>>, vector<1x1x8x8xbf16>
    %111 = vector.shape_cast %110 : vector<1x1x8x8xbf16> to vector<8x8xbf16>
    %cst_79 = arith.constant dense<0.000000e+00> : vector<8x128xf32>
    %112 = tpu.matmul %111, %109, %cst_79 {dimension_numbers = #tpu.dot_dimension_numbers<[1], [0], [0], [1], [0, 0, 1, 1], [], []>} : vector<8x8xbf16>, vector<8x128xbf16>, vector<8x128xf32> -> vector<8x128xf32>
    %113 = arith.addf %105, %112 : vector<8x128xf32>
    %114 = vector.broadcast %7 : vector<8x1xf32> to vector<8x128xf32>
    %115 = arith.addf %113, %114 : vector<8x128xf32>
    %116 = vector.extract_strided_slice %66 {offsets = [0, 2], sizes = [8, 126], strides = [1, 1]} : vector<8x128xf32> to vector<8x126xf32>
    %117 = vector.extract_strided_slice %66 {offsets = [0, 0], sizes = [8, 2], strides = [1, 1]} : vector<8x128xf32> to vector<8x2xf32>
    %118 = tpu.concatenate %116, %117 in 1 : vector<8x126xf32>, vector<8x2xf32> -> vector<8x128xf32>
    %119 = arith.addf %115, %118 : vector<8x128xf32>
    %cst_80 = arith.constant 0.000000e+00 : f32
    %120 = vector.broadcast %cst_80 : f32 to vector<8x128xf32>
    %121 = arith.cmpf ogt, %119, %120 : vector<8x128xf32>
    %cst_81 = arith.constant 0.00999999977 : f32
    %122 = vector.broadcast %cst_81 : f32 to vector<8x128xf32>
    %123 = arith.mulf %122, %119 : vector<8x128xf32>
    %124 = arith.select %121, %119, %123 : vector<8x128xi1>, vector<8x128xf32>
    %c0_82 = arith.constant 0 : index
    %c0_83 = arith.constant 0 : index
    %c0_84 = arith.constant 0 : index
    %125 = vector.load %arg6[%c0_82, %c0_83, %c0_84] : memref<1x8x128xf32, #tpu.memory_space<vmem>>, vector<1x8x128xf32>
    %126 = vector.shape_cast %125 : vector<1x8x128xf32> to vector<8x128xf32>
    %127 = vector.shape_cast %124 : vector<8x128xf32> to vector<1x8x128xf32>
    tpu.vector_store %arg6[%c0_82, %c0_83, %c0_84], %127 {strides = array<i32>} : memref<1x8x128xf32, #tpu.memory_space<vmem>>, vector<1x8x128xf32>,
    return
  }
  func.func @transform_0(%arg0: i32) -> (i32, i32, i32) {
    %c0_i32 = arith.constant 0 : i32
    %c0_i32_0 = arith.constant 0 : i32
    %c0_i32_1 = arith.constant 0 : i32
    return %arg0, %c0_i32, %c0_i32_0 : i32, i32, i32
  }
  func.func @transform_1(%arg0: i32) -> (i32, i32, i32) {
    %c0_i32 = arith.constant 0 : i32
    %c0_i32_0 = arith.constant 0 : i32
    %c0_i32_1 = arith.constant 0 : i32
    return %arg0, %c0_i32, %c0_i32_0 : i32, i32, i32
  }
  func.func @transform_2(%arg0: i32) -> (i32, i32) {
    %c0_i32 = arith.constant 0 : i32
    %c0_i32_0 = arith.constant 0 : i32
    %c0_i32_1 = arith.constant 0 : i32
    return %c0_i32, %c0_i32_0 : i32, i32
  }
  func.func @transform_3(%arg0: i32) -> (i32, i32, i32, i32) {
    %c0_i32 = arith.constant 0 : i32
    %c0_i32_0 = arith.constant 0 : i32
    %c0_i32_1 = arith.constant 0 : i32
    %c0_i32_2 = arith.constant 0 : i32
    %c0_i32_3 = arith.constant 0 : i32
    return %c0_i32, %c0_i32_0, %c0_i32_1, %c0_i32_2 : i32, i32, i32, i32
  }
  func.func @transform_4(%arg0: i32) -> (i32, i32, i32) {
    %c0_i32 = arith.constant 0 : i32
    %c0_i32_0 = arith.constant 0 : i32
    %c0_i32_1 = arith.constant 0 : i32
    %c0_i32_2 = arith.constant 0 : i32
    return %c0_i32, %c0_i32_0, %c0_i32_1 : i32, i32, i32
  }
  func.func @transform_5(%arg0: i32) -> (i32, i32, i32) {
    %c0_i32 = arith.constant 0 : i32
    %c0_i32_0 = arith.constant 0 : i32
    %c0_i32_1 = arith.constant 0 : i32
    return %arg0, %c0_i32, %c0_i32_0 : i32, i32, i32
  }
}

</mosaic_0001>

<bundles_post_ra>
// kernel: tpu_custom_call.1
= control target key start
LH: loop header
LB: loop body
LE: loop exit
PB: predicated region body
PF: predicated region fallthrough
CT: control target
= control target key end

     0   :  { %6 = vsyncpa [#allocation3], 0  ;;  %s118_s0 = inlined_call_operand.hbm [shape: f32[8,128], index: 0, kind: input, shape index: {}]   ;;  %s119_s1 = inlined_call_operand.hbm [shape: f32[8,128], index: 1, kind: output, shape index: {}]  }
   0x1   :  { %7 = vsyncpa [#allocation4], 0  ;;  %s13_s8 = sshll.u32 %s118_s0, 4  ;;  %s99_s9 = smov [#allocation2]   ;;  %s14_s8 = int_to_ptr.hbm [resolvable:$true] %s13_s8 }
   0x2   :  { %s15_s10 = sshll.u32 %s99_s9, 4  ;;  %s16_s10 = int_to_ptr.vmem [resolvable:$true] %s15_s10 }
   0x3   :  { %18 = dma.hbm_to_vmem [thread:$0]  %s14_s8, 128, %s16_s10, [#allocation3]  }
   0x4   :  { %95 = dma.done.wait [#allocation3], 128  }
   0x5   :  { %96 = vsyncadd [#allocation3], 4294967168  ;;  %v23_v0 = vld [vmem:[#allocation2] sm:$0xff]  ;;  %s100_s11 = smov 1   ;;  %s101_s12 = smov [#allocation5]  }
   0x6   :  { %24 = vrot.lane.b32.xlu0 %v23_v0, %s100_s11  ;;  %s32_s13 = sshll.u32 %s101_s12, 4  ;;  %s34_s16 = sshll.u32 %s119_s1, 4  ;;  %s33_s13 = int_to_ptr.vmem [resolvable:$true] %s32_s13  ;;  %s35_s16 = int_to_ptr.hbm [resolvable:$true] %s34_s16 }
  0x78   :  { %v25_v1 = vpop.permute.xlu0 %24 }
  0x79   :  { %26 = vst [vmem:[#allocation5] sm:$0xff] %v25_v1 }
  0x7a   :  { %37 = dma.vmem_to_hbm [thread:$0]  %s33_s13, 128, %s35_s16, [#allocation4]  }
  0x7b   :  { %97 = dma.done.wait [#allocation4], 128  }
  0x7c   :  { %98 = vsyncadd [#allocation4], 4294967168 }
  0x7d   :  { %42 = vsyncpa [#allocation3], 1 }
  0x7e   :  { %43 = vsyncpa [#allocation4], 1 }

// kernel: tpu_custom_call.1
= control target key start
LH: loop header
LB: loop body
LE: loop exit
PB: predicated region body
PF: predicated region fallthrough
CT: control target
= control target key end

     0   :  { %10 = vsyncpa [#allocation3], 0  ;;  %s1088_s0 = inlined_call_operand.vmem [shape: bf16[2,8,128], index: 0, kind: input, shape index: {}]   ;;  %s1089_s1 = inlined_call_operand.vmem [shape: f32[2,8,128], index: 1, kind: input, shape index: {}]   ;;  %s1090_s2 = inlined_call_operand.vmem [shape: bf16[8,8], index: 2, kind: input, shape index: {}]   ;;  %s1091_s3 = inlined_call_operand.hbm [shape: bf16[4,3,8,8], index: 3, kind: input, shape index: {}]   ;;  %s1092_s4 = inlined_call_operand.vmem [shape: f32[4,8,1], index: 4, kind: input, shape index: {}]   ;;  %s1093_s5 = inlined_call_operand.hbm [shape: f32[2,8,128], index: 5, kind: output, shape index: {}]  }
   0x1   :  { %11 = vsyncpa [#allocation4], 0 }
   0x2   :  { %13 = vsyncpa [#allocation4 + $0x1], 0  ;;  %s942_s18 = smov 0   ;;  %s944_s19 = smov 0  }
   0x3   :  { %s946_s20 = smov 0   ;;  %s948_s21 = smov 0  }
   0x4 LB: > { %s963_s22 = sadd.s32 4294967295, %s902_s21   ;;  %s719_s23 = sadd.s32 4294967294, %s902_s21   ;;  %s902_s21 = sphi %s948_s21, %s1099_s21   ;;  %s898_s20 = sphi %s946_s20, %s1098_s20   ;;  %s894_s19 = sphi %s944_s19, %s1097_s19   ;;  %s890_s18 = sphi %s942_s18, %s1096_s18  }
   0x5   : > { %s967_s24 = sadd.s32 1, %s902_s21   ;;  %s141_s25 = sadd.s32 1, %s898_s20 }
   0x6   : > { %s138_s26 = ssub.s32 %s902_s21, %s967_s24  ;;  %p151_p0 = scmp.ne.s32.totalorder %s898_s20, %s894_s19 }
   0x7   : > { %p139_p1 = scmp.eq.s32.totalorder %s138_s26, 0  ;;  %p152_p2 = scmp.eq.s32.totalorder %s963_s22, 1 }
   0x8   : > { %p157_p3 = scmp.ne.s32.totalorder %s894_s19, %s890_s18  ;;  %p158_p4 = scmp.eq.s32.totalorder %s719_s23, 1 }
   0x9   : > { %s978_s27 = scalar_select %p139_p1, %s898_s20, %s141_s25  }
   0xa   : > { %p980_p5 = por %p152_p2, %p151_p0  ;;  %p984_p6 = por %p158_p4, %p157_p3 }
   0xb   : > { %p720_p7 = scmp.ge.s32.totalorder %s902_s21, 1  ;;  %p165_p8 = scmp.lt.s32.totalorder %s902_s21, 3 }
   0xc   : > { %p762_p9 = scmp.eq.s32.totalorder %s963_s22, 0  ;;  %s179_s7 = sshll.u32 %s1091_s3, 4  ;;  %s180_s7 = int_to_ptr.hbm [resolvable:$true] %s179_s7 }
   0xd   : > { %p166_p10 = pnand %p720_p7, %p165_p8  ;;  %s904_s8 = smov [#allocation2]  }
   0xe   : > { %s181_s9 = sshll.u32 %s904_s8, 4  ;;  %s905_s10 = smov 64   ;;  %s182_s9 = int_to_ptr.vmem [resolvable:$true] %s181_s9 }
   0xf   : > { %p754_p11 = pneg %p166_p10  ;;  %s906_s11 = smov 4  }
  0x10   : > { %214 = sbr.rel (%p166_p10) target bundleno = 962 (0x3c2), region = 40 }
  0x11   : > { %p755_p12 = pnand %p762_p9, %p754_p11 }
  0x13   : > { %757 = dma.hbm_to_vmem [thread:$0]  (!%p755_p12), %s180_s7, 768, %s182_s9, [#allocation3], %s905_s10, %s905_s10, %s906_s11  }
  0x15   : > { %881 = dma.done.wait (%p762_p9), [#allocation3], 768  }
  0x16   : > { %883 = vsyncadd (%p762_p9), [#allocation3], 4294966528  ;;  %p246_p13 = scmp.lt.s32.totalorder %s963_s22, 1  ;;  %v907_v0 = vmov 0   ;;  %vm273_vm0 = vcmask 1043456   ;;  %v255_v2 = vld [vmem:[%s1092_s4] sm:$0xff] }
  0x17   : > { %805 = vset.pattern.permute.xlu0 %v907_v0  ;;  %v262_v4 = vld [vmem:[%s1090_s2] sm:$0xf]  ;;  %vm269_vm1 = vcmask 64512   ;;  %s908_s9 = smov 126   ;;  %s909_s10 = smov 125   ;;  %v728_v15 = vld [vmem:[%s1092_s4 + $0x8] sm:$0xff] }
  0x18   : > { %s247_s12 = scalar_select %p246_p13, %s963_s22, 1  ;;  %266 = vperm.xlu0 %805, %v255_v2   ;;  %v294_v14 = vld [vmem:[#allocation2] sm:$0xf]  ;;  %v729_v16 = vld [vmem:[%s1092_s4 + $0x10] sm:$0xff]  ;;  %v730_v17 = vld [vmem:[%s1092_s4 + $0x18] sm:$0xff] }
  0x19   : > { %s910_s11 = smov 127   ;;  %s911_s14 = smov 124   ;;  %v373_v21 = vld [vmem:[#allocation2 + $0xc] sm:$0xf]  ;;  %v301_v31 = vld [vmem:[#allocation2 + $0x4] sm:$0xf] }
  0x1a   : > { %s726_s13 = sshll.u32 %s247_s12, 2  ;;  %s727_s30 = sshll.u32 %s247_s12, 3  ;;  %v345_v32 = vld [vmem:[#allocation2 + $0x8] sm:$0xf]  ;;  %v425_v36 = vld [vmem:[#allocation2 + $0x14] sm:$0xf] }
  0x1b   : > { %s249_s16 = scalar_lea.vmem %s1088_s0, %s726_s13  ;;  %s253_s8 = scalar_lea.vmem %s1089_s1, %s727_s30  ;;  %v399_v37 = vld [vmem:[#allocation2 + $0x10] sm:$0xf]  ;;  %v454_v59 = vld [vmem:[#allocation2 + $0x18] sm:$0xf]  ;;  %v505_v63 = vld [vmem:[#allocation2 + $0x20] sm:$0xf] }
  0x1c   : > { %v263_v1 = vld [vmem:[%s249_s16] sm:$0xf]  ;;  %s243_s25 = sand.u32 1, %s894_s19   ;;  %s745_s30 = sshll.u32 %s963_s22, 3 }
  0x1d   : > { %v275_v3 = vsel %vm273_vm0, %v263_v1, 0  ;;  %v366_v5 = vld [vmem:[%s253_s8] sm:$0xff]  ;;  %s725_s26 = sshll.u32 %s243_s25, 3  ;;  %s631_s8 = scalar_lea.hbm %s1093_s5, %s745_s30 }
  0x1e   : > { %284 = vmatpush.bf16.msra.mxu0 %v275_v3  ;;  %368 = vrot.lane.b32.xlu2 %v366_v5, %s908_s9  ;;  %v461_v3 = vld [vmem:[#allocation2 + $0x1c] sm:$0xf]  ;;  %s621_s22 = scalar_lea.sflag [#allocation4], %s243_s25  ;;  %s856_s16 = scalar_lea.hbm %s1093_s5, 16 }
  0x21   : > { %731 = vmatmul.msk.bf16.vlgmr.msra.gmra.mxu0 %vm269_vm1, %v262_v4 }
  0x26   : > { %394 = vrot.lane.b32.xlu2 %v366_v5, %s909_s10 }
  0x78   : > { %v369_v18 = vpop.permute.xlu2 %368 }
  0x79   : > { %v371_v19 = vpack.c.bf16 %v369_v18, %v369_v18  ;;  %v537_v18 = vld [vmem:[#allocation2 + $0x24] sm:$0xf] }
  0x7b   : > { %v378_v20 = vsel %vm273_vm0, %v371_v19, 0 }
  0x7c   : > { %387 = vmatpush.bf16.msrb.mxu0 %v378_v20 }
  0x7f   : > { %735 = vmatmul.msk.bf16.vlgmr.msrb.gmra.mxu0 %vm269_vm1, %v373_v21 }
  0x80   : > { %v395_v22 = vpop.permute.xlu2 %394 }
  0x81   : > { %v397_v23 = vpack.c.bf16 %v395_v22, %v395_v22  ;;  %v588_v22 = vld [vmem:[#allocation2 + $0x2c] sm:$0xf] }
  0x83   : > { %v404_v28 = vsel %vm273_vm0, %v397_v23, 0 }
  0x8a   : > { %v267_v6 = vpop.permute.xlu0 %266 }
  0x9e   : > { %v286_v7 = vpop.f32.mrf.mxu0 }
  0x9f   : > { %v287_v8 = vadd.f32 %v286_v7, %v267_v6 }
  0xa1   : > { %v291_v9 = vmul.f32 0.01, %v287_v8  ;;  %vm290_vm2 = vcmp.gt.f32.partialorder %v287_v8, 0.0 }
  0xa3   : > { %v292_v10 = vsel %vm290_vm2, %v287_v8, %v291_v9 }
  0xa4   : > { %340 = vrot.lane.b32.xlu1 %v292_v10, %s908_s9  ;;  %296 = vrot.lane.b32.xlu0 %v292_v10, %s910_s11  ;;  %v293_v11 = vpack.c.bf16 %v292_v10, %v292_v10 }
  0xa6   : > { %v288_v12 = vpop.f32.mrf.mxu0  ;;  %v325_v13 = vsel %vm273_vm0, %v293_v11, 0 }
  0xa7   : > { %334 = vmatpush.bf16.msra.mxu2 %v325_v13 }
  0xaa   : > { %733 = vmatmul.msk.bf16.vlgmr.msra.gmra.mxu2 %vm269_vm1, %v294_v14 }
  0xac   : > { %420 = vrot.lane.b32.xlu1 %v366_v5, %s911_s14  ;;  %448 = vperm.xlu0 %805, %v728_v15  }
  0xb4   : > { %528 = vperm.xlu0 %805, %v729_v16  }
  0xbc   : > { %611 = vperm.xlu0 %805, %v730_v17  }
  0xfc   : > { %v389_v40 = vpop.f32.mrf.mxu0 }
 0x104   : > { %v391_v41 = vpop.f32.mrf.mxu0 }
 0x116   : > { %v341_v24 = vpop.permute.xlu1 %340  ;;  %v297_v25 = vpop.permute.xlu0 %296 }
 0x117   : > { %v343_v26 = vpack.c.bf16 %v341_v24, %v341_v24  ;;  %v299_v27 = vpack.c.bf16 %v297_v25, %v297_v25 }
 0x119   : > { %v306_v29 = vsel %vm273_vm0, %v299_v27, 0  ;;  %v350_v30 = vsel %vm273_vm0, %v343_v26, 0  ;;  %v544_v26 = vld [vmem:[#allocation2 + $0x28] sm:$0xf] }
 0x11a   : > { %315 = vmatpush.bf16.msra.mxu1 %v306_v29  ;;  %359 = vmatpush.bf16.msra.mxu3 %v350_v30 }
 0x11d   : > { %732 = vmatmul.msk.bf16.vlgmr.msra.gmra.mxu1 %vm269_vm1, %v301_v31  ;;  %734 = vmatmul.msk.bf16.vlgmr.msra.gmra.mxu3 %vm269_vm1, %v345_v32 }
 0x11e   : > { %413 = vmatpush.bf16.msrb.mxu1 %v404_v28  ;;  %v421_v33 = vpop.permute.xlu1 %420  ;;  %v449_v53 = vpop.permute.xlu0 %448 }
 0x11f   : > { %v423_v34 = vpack.c.bf16 %v421_v33, %v421_v33 }
 0x121   : > { %v430_v35 = vsel %vm273_vm0, %v423_v34, 0 }
 0x122   : > { %439 = vmatpush.bf16.msrb.mxu2 %v430_v35 }
 0x125   : > { %737 = vmatmul.msk.bf16.vlgmr.msrb.gmra.mxu2 %vm269_vm1, %v425_v36 }
 0x126   : > { %v529_v11 = vpop.permute.xlu0 %528 }
 0x12d   : > { %736 = vmatmul.msk.bf16.vlgmr.msrb.gmra.mxu1 %vm269_vm1, %v399_v37  ;;  %v336_v38 = vpop.f32.mrf.mxu2 }
 0x12e   : > { %v612_v34 = vpop.permute.xlu0 %611 }
 0x135   : > { %v338_v39 = vpop.f32.mrf.mxu2 }
 0x19a   : > { %v317_v42 = vpop.f32.mrf.mxu1 }
 0x19b   : > { %v337_v45 = vadd.f32 %v336_v38, %v317_v42 }
 0x1a0   : > { %v361_v43 = vpop.f32.mrf.mxu3 }
 0x1a1   : > { %v365_v46 = vadd.f32 %v361_v43, %v337_v45 }
 0x1a2   : > { %v319_v44 = vpop.f32.mrf.mxu1 }
 0x1a3   : > { %v393_v49 = vadd.f32 %v389_v40, %v365_v46 }
 0x1a8   : > { %v363_v47 = vpop.f32.mrf.mxu3  ;;  %v441_v48 = vpop.f32.mrf.mxu2 }
 0x1aa   : > { %v415_v50 = vpop.f32.mrf.mxu1 }
 0x1ab   : > { %v419_v51 = vadd.f32 %v415_v50, %v393_v49 }
 0x1ad   : > { %v445_v52 = vadd.f32 %v441_v48, %v419_v51 }
 0x1af   : > { %v451_v54 = vadd.f32 %v449_v53, %v445_v52 }
 0x1b0   : > { %v443_v55 = vpop.f32.mrf.mxu2 }
 0x1b1   : > { %500 = vrot.lane.b32.xlu2 %v451_v54, %s908_s9  ;;  %456 = vrot.lane.b32.xlu1 %v451_v54, %s910_s11  ;;  %v452_v56 = vpack.c.bf16 %v451_v54, %v451_v54 }
 0x1b2   : > { %v417_v57 = vpop.f32.mrf.mxu1 }
 0x1b3   : > { %v485_v58 = vsel %vm273_vm0, %v452_v56, 0 }
 0x1b4   : > { %494 = vmatpush.bf16.msra.mxu0 %v485_v58 }
 0x1b7   : > { %739 = vmatmul.msk.bf16.vlgmr.msra.gmra.mxu0 %vm269_vm1, %v454_v59 }
 0x20b   : > { %v501_v60 = vpop.permute.xlu2 %500 }
 0x20c   : > { %v503_v61 = vpack.c.bf16 %v501_v60, %v501_v60 }
 0x20e   : > { %v510_v62 = vsel %vm273_vm0, %v503_v61, 0 }
 0x20f   : > { %519 = vmatpush.bf16.msra.mxu1 %v510_v62 }
 0x212   : > { %740 = vmatmul.msk.bf16.vlgmr.msra.gmra.mxu1 %vm269_vm1, %v505_v63 }
 0x223   : > { %v457_v0 = vpop.permute.xlu1 %456 }
 0x224   : > { %v459_v1 = vpack.c.bf16 %v457_v0, %v457_v0 }
 0x226   : > { %v466_v2 = vsel %vm273_vm0, %v459_v1, 0 }
 0x227   : > { %475 = vmatpush.bf16.msrb.mxu3 %v466_v2 }
 0x22a   : > { %738 = vmatmul.msk.bf16.vlgmr.msrb.gmra.mxu3 %vm269_vm1, %v461_v3 }
 0x234   : > { %v496_v4 = vpop.f32.mrf.mxu0 }
 0x23c   : > { %v498_v5 = vpop.f32.mrf.mxu0 }
 0x28f   : > { %v521_v6 = vpop.f32.mrf.mxu1 }
 0x297   : > { %v523_v7 = vpop.f32.mrf.mxu1 }
 0x2ad   : > { %v477_v8 = vpop.f32.mrf.mxu3 }
 0x2ae   : > { %v497_v9 = vadd.f32 %v496_v4, %v477_v8 }
 0x2b0   : > { %v525_v10 = vadd.f32 %v521_v6, %v497_v9 }
 0x2b2   : > { %v531_v12 = vadd.f32 %v529_v11, %v525_v10 }
 0x2b4   : > { %vm532_vm3 = vcmp.gt.f32.partialorder %v531_v12, 0.0  ;;  %v533_v13 = vmul.f32 0.01, %v531_v12 }
 0x2b5   : > { %v479_v14 = vpop.f32.mrf.mxu3 }
 0x2b6   : > { %v534_v15 = vsel %vm532_vm3, %v531_v12, %v533_v13 }
 0x2b7   : > { %583 = vrot.lane.b32.xlu2 %v534_v15, %s908_s9  ;;  %v535_v16 = vpack.c.bf16 %v534_v15, %v534_v15  ;;  %539 = vrot.lane.b32.xlu1 %v534_v15, %s910_s11  ;;  %s245_s9 = scalar_lea.vmem [#allocation5], %s725_s26  ;;  %s635_s11 = sshll.u32 %s631_s8, 4  ;;  %s636_s11 = int_to_ptr.hbm [resolvable:$true] %s635_s11 }
 0x2b8   : > { %s633_s10 = sshll.u32 %s245_s9, 4  ;;  %s850_s12 = sshra.s32 %s636_s11, 4  ;;  %s634_s10 = int_to_ptr.vmem [resolvable:$true] %s633_s10  ;;  %s851_s12 = int_to_ptr.hbm [resolvable:$true] %s850_s12 }
 0x2b9   : > { %v568_v17 = vsel %vm273_vm0, %v535_v16, 0  ;;  %s852_s13 = scalar_lea.hbm %s851_s12, 8  ;;  %p857_p3 = scmp.lt.s32.totalorder %s851_s12, %s1093_s5 }
 0x2ba   : > { %577 = vmatpush.bf16.msra.mxu3 %v568_v17  ;;  %p853_p0 = scmp.ne.s32.totalorder %s851_s12, %s852_s13  ;;  %p858_p4 = scmp.lt.s32.totalorder %s856_s16, %s852_s13 }
 0x2bc   : > { %p854_p1 = pnand %p853_p0, %p980_p5  ;;  %p859_p7 = por %p858_p4, %p857_p3 }
 0x2bd   : > { %742 = vmatmul.msk.bf16.vlgmr.msra.gmra.mxu3 %vm269_vm1, %v537_v18 }
 0x2be   : > { %p855_p2 = pneg %p854_p1 }
 0x2c0   : > { %p860_p8 = pnand %p859_p7, %p855_p2 }
 0x311   : > { %v584_v19 = vpop.permute.xlu2 %583 }
 0x312   : > { %v586_v20 = vpack.c.bf16 %v584_v19, %v584_v19 }
 0x314   : > { %v593_v21 = vsel %vm273_vm0, %v586_v20, 0 }
 0x315   : > { %602 = vmatpush.bf16.msrb.mxu0 %v593_v21 }
 0x318   : > { %743 = vmatmul.msk.bf16.vlgmr.msrb.gmra.mxu0 %vm269_vm1, %v588_v22 }
 0x329   : > { %v540_v23 = vpop.permute.xlu1 %539 }
 0x32a   : > { %v542_v24 = vpack.c.bf16 %v540_v23, %v540_v23 }
 0x32c   : > { %v549_v25 = vsel %vm273_vm0, %v542_v24, 0 }
 0x32d   : > { %558 = vmatpush.bf16.msra.mxu2 %v549_v25 }
 0x330   : > { %741 = vmatmul.msk.bf16.vlgmr.msra.gmra.mxu2 %vm269_vm1, %v544_v26 }
 0x340   : > { %v579_v27 = vpop.f32.mrf.mxu3 }
 0x348   : > { %v581_v28 = vpop.f32.mrf.mxu3 }
 0x395   : > { %v604_v29 = vpop.f32.mrf.mxu0 }
 0x39d   : > { %v606_v30 = vpop.f32.mrf.mxu0 }
 0x3b3   : > { %v560_v31 = vpop.f32.mrf.mxu2 }
 0x3b4   : > { %v580_v32 = vadd.f32 %v579_v27, %v560_v31 }
 0x3b6   : > { %v608_v33 = vadd.f32 %v604_v29, %v580_v32 }
 0x3b8   : > { %v614_v35 = vadd.f32 %v612_v34, %v608_v33 }
 0x3ba   : > { %v615_v36 = vadd.f32 %v614_v35, %v501_v60 }
 0x3bb   : > { %v562_v37 = vpop.f32.mrf.mxu2 }
 0x3bc   : > { %vm616_vm4 = vcmp.gt.f32.partialorder %v615_v36, 0.0  ;;  %v617_v38 = vmul.f32 0.01, %v615_v36 }
 0x3be   : > { %v618_v39 = vsel %vm616_vm4, %v615_v36, %v617_v38 }
 0x3bf   : > { %619 = vst [vmem:[%s245_s9] sm:$0xff] %v618_v39 }
 0x3c0   : > { %863 = shalt.err (!%p860_p8)
}
 0x3c1   : > { %752 = dma.vmem_to_hbm [thread:$0]  (%p980_p5), %s634_s10, 128, %s636_s11, %s621_s22  }
 0x3c2 PF: > { %p764_p9 = scmp.ge.s32.totalorder %s902_s21, 2  ;;  %s647_s25 = sand.u32 1, %s890_s18  }
 0x3c3   : > { %s648_s26 = scalar_lea.sflag [#allocation4], %s647_s25 }
 0x3c4   : > { %p759_p10 = pnand %p764_p9, %p984_p6 }
 0x3c6   : > { %p760_p11 = pneg %p759_p10 }
 0x3c8   : > { %885 = dma.done.wait (%p760_p11), %s648_s26, 128  }
 0x3c9   : > { %887 = vsyncadd (%p760_p11), %s648_s26, 4294967168  ;;  %p16_p12 = scmp.ge.s32.totalorder %s967_s24, 4   ;;  %s1096_s18 = smov %s894_s19 }
 0x3ca   : > { %s1097_s19 = smov %s898_s20  ;;  %s1098_s20 = smov %s978_s27 }
 0x3cb   : > { %s1099_s21 = smov %s967_s24  ;;  %18 = sbr.rel (!%p16_p12) target bundleno = 4 (0x4), region = 97 }
 0x3d0   :  { %654 = vsyncpa [#allocation3], 1 }
 0x3d1   :  { %656 = vsyncpa [#allocation3 + $0x1], 1 }
 0x3d2   :  { %657 = vsyncpa [#allocation4], 1 }
 0x3d3   :  { %659 = vsyncpa [#allocation4 + $0x1], 1 }

</bundles_post_ra>
